<compile_context>
chip_gen: v7x
topology: tpu7x:2x2x1
jax: 0.10.0
libtpu: 0.0.40
codegen_flags: <defaults>
</compile_context>

<pallas_src>
import jax
import jax.numpy as jnp
from jax.experimental import pallas as pl
from jax.experimental.pallas import tpu as pltpu


def _cmix_kernel(x_ref, xx_ref, maa_k_ref, maa_r_ref, wk_ref, wv_ref, wr_ref,
                 out_ref, kv_acc, r_sc):
    # x_ref, xx_ref : (TILE_M, C)   activations / token-shift delta (x.dtype)
    # maa_k/r_ref   : (1, C)        mixing coefficients (f32, resident)
    # wk_ref        : (C, TILE_F)   key.weight^T tile         (compute dtype)
    # wv_ref        : (TILE_F, C)   value.weight^T tile       (compute dtype)
    # wr_ref        : (C, C)        receptance.weight^T       (compute dtype, resident)
    # out_ref       : (TILE_M, C)
    # kv_acc, r_sc  : (TILE_M, C)   f32 VMEM scratch
    f = pl.program_id(1)
    nf = pl.num_programs(1)

    @pl.when(f == 0)
    def _init():
        kv_acc[...] = jnp.zeros_like(kv_acc)
        # r = sigmoid((x + xx*maa_r) @ Wr^T) -- once per token tile.
        xr = x_ref[...] + xx_ref[...] * maa_r_ref[...]
        r = jnp.dot(xr.astype(wr_ref.dtype), wr_ref[...],
                    preferred_element_type=jnp.float32)
        r_sc[...] = jax.nn.sigmoid(r)

    # xk mix is recomputed per f step: 2 VPU ops/element, free filler under the MXU.
    xk = x_ref[...] + xx_ref[...] * maa_k_ref[...]
    # k = relu(xk @ Wk_f)^2   (f32 accumulation on the MXU)
    k = jnp.dot(xk.astype(wk_ref.dtype), wk_ref[...],
                preferred_element_type=jnp.float32)
    k = jnp.maximum(k, 0.0)
    k = k * k
    # kv += k @ Wv_f
    kv_acc[...] += jnp.dot(k.astype(wv_ref.dtype), wv_ref[...],
                           preferred_element_type=jnp.float32)

    @pl.when(f == nf - 1)
    def _finalize():
        out_ref[...] = (r_sc[...] * kv_acc[...]).astype(out_ref.dtype)


def _pick_tile(total, target, align):
    """Largest multiple of `align` that divides `total` and is <= target.
    Falls back to the full extent (always satisfies BlockSpec rules)."""
    if total <= target or total % align != 0:
        return total
    t = min(target, total)
    t -= t % align
    while t >= align:
        if total % t == 0:
            return t
        t -= align
    return total


def rwkv_cmix_x060(x, token_shift_state, time_maa_k, time_maa_r,
                   w_key, w_receptance, w_value,
                   *, compute_dtype=jnp.bfloat16, tile_m=512, tile_f=512):
    """x: (B, T, C).  Weights in torch nn.Linear layout:
         w_key (dim_ffn, C), w_receptance (C, C), w_value (C, dim_ffn).
       Returns (B, T, C) in x.dtype."""
    B, T, C = x.shape
    dim_ffn = w_key.shape[0]
    BT = B * T

    # ---- token shift in XLA (prev token; first token from the learned state).
    # Cheap single pass; keeps the kernel free of the 1-row cross-tile halo.
    ts = jnp.broadcast_to(
        token_shift_state.astype(x.dtype).reshape(1, 1, C), (B, 1, C))
    xx = (jnp.concatenate([ts, x[:, :-1, :]], axis=1) - x).reshape(BT, C)
    x2 = x.reshape(BT, C)

    maa_k = jnp.reshape(time_maa_k, (1, C)).astype(jnp.float32)
    maa_r = jnp.reshape(time_maa_r, (1, C)).astype(jnp.float32)

    # ---- pre-transpose weights once -> kernel does plain x @ W (no in-kernel .T) ----
    wk_t = w_key.T.astype(compute_dtype)            # (C, dim_ffn)
    wv_t = w_value.T.astype(compute_dtype)          # (dim_ffn, C)
    wr_t = w_receptance.T.astype(compute_dtype)     # (C, C)

    tm = _pick_tile(BT, tile_m, 8)
    tf = _pick_tile(dim_ffn, tile_f, 128)
    grid = (BT // tm, dim_ffn // tf)

    # ---- VMEM budget estimate (double-buffered blocks + scratch), clamped safe ----
    xb = jnp.dtype(x.dtype).itemsize
    cb = jnp.dtype(compute_dtype).itemsize
    est = (2 * 2 * tm * C * xb          # x, xx
           + 2 * C * 4                  # maa_k, maa_r
           + 2 * C * tf * cb            # Wk^T tile
           + 2 * tf * C * cb            # Wv^T tile
           + 2 * C * C * cb             # Wr^T (resident)
           + 2 * tm * C * xb            # out
           + 2 * tm * C * 4)            # kv + r scratch (f32)
    vmem_limit = int(min(max(int(est * 1.5), 32 * 1024 * 1024), 64 * 1024 * 1024))

    flops = 2 * BT * C * (2 * dim_ffn + C)
    bytes_accessed = (3 * BT * C) * xb + (2 * C * dim_ffn + C * C) * cb
    cost = pl.CostEstimate(flops=flops, transcendentals=BT * C,
                           bytes_accessed=bytes_accessed)

    grid_spec = pltpu.PrefetchScalarGridSpec(
        num_scalar_prefetch=0,
        grid=grid,
        in_specs=[
            pl.BlockSpec((tm, C), lambda i, f: (i, 0)),   # x
            pl.BlockSpec((tm, C), lambda i, f: (i, 0)),   # xx
            pl.BlockSpec((1, C), lambda i, f: (0, 0)),    # maa_k (resident)
            pl.BlockSpec((1, C), lambda i, f: (0, 0)),    # maa_r (resident)
            pl.BlockSpec((C, tf), lambda i, f: (0, f)),   # Wk^T tile
            pl.BlockSpec((tf, C), lambda i, f: (f, 0)),   # Wv^T tile
            pl.BlockSpec((C, C), lambda i, f: (0, 0)),    # Wr^T (resident)
        ],
        out_specs=pl.BlockSpec((tm, C), lambda i, f: (i, 0)),
        scratch_shapes=[pltpu.VMEM((tm, C), jnp.float32),   # kv accumulator
                        pltpu.VMEM((tm, C), jnp.float32)],  # r = sigmoid(xr @ Wr)
    )

    out = pl.pallas_call(
        _cmix_kernel,
        out_shape=jax.ShapeDtypeStruct((BT, C), x.dtype),
        grid_spec=grid_spec,
        compiler_params=pltpu.CompilerParams(
            dimension_semantics=("parallel", "arbitrary"),
            vmem_limit_bytes=vmem_limit),
        cost_estimate=cost,
    )(x2, xx, maa_k, maa_r, wk_t, wv_t, wr_t)
    return out.reshape(B, T, C)


def rwkv_cmix_x060_ref(x, token_shift_state, time_maa_k, time_maa_r,
                       w_key, w_receptance, w_value, compute_dtype=jnp.float32):
    """Pure-JAX reference matching the PyTorch forward.  With compute_dtype=bf16 it
    mirrors the kernel's mixed-precision path (bf16 matmul operands, f32 accum)."""
    B, T, C = x.shape
    hp = jax.lax.Precision.HIGHEST
    ts = jnp.broadcast_to(
        token_shift_state.astype(x.dtype).reshape(1, 1, C), (B, 1, C))
    xx = jnp.concatenate([ts, x[:, :-1, :]], axis=1) - x
    maa_k = jnp.reshape(time_maa_k, (1, 1, C)).astype(jnp.float32)
    maa_r = jnp.reshape(time_maa_r, (1, 1, C)).astype(jnp.float32)
    xk = (x + xx * maa_k).astype(compute_dtype)
    xr = (x + xx * maa_r).astype(compute_dtype)
    wk = w_key.astype(compute_dtype)
    wr = w_receptance.astype(compute_dtype)
    wv = w_value.astype(compute_dtype)
    k = jnp.einsum('btc,fc->btf', xk, wk,
                   preferred_element_type=jnp.float32, precision=hp)
    k = jnp.maximum(k, 0.0) ** 2
    kv = jnp.einsum('btf,cf->btc', k.astype(compute_dtype), wv,
                    preferred_element_type=jnp.float32, precision=hp)
    r = jax.nn.sigmoid(jnp.einsum('btc,dc->btd', xr, wr,
                                  preferred_element_type=jnp.float32, precision=hp))
    return (r * kv).astype(x.dtype)


if __name__ == "__main__":
    # Small config: n_embd=128, dim_ffn=256, n_layer=4, layer_id=1, B=2, T=64
    # (sized so the kernel exercises a real (2, 2) grid: token tiles + ffn reduction).
    B, T, C, DIM_FFN = 2, 64, 128, 256
    n_layer, layer_id = 4, 1

    key = jax.random.PRNGKey(0)
    kx, kk, kr, kv_key = jax.random.split(key, 4)

    ratio_1_to_almost0 = 1.0 - layer_id / n_layer
    ddd = jnp.arange(C, dtype=jnp.float32) / C            # ddd[0,0,i] = i / n_embd
    time_maa_k = 1.0 - jnp.power(ddd, ratio_1_to_almost0)
    time_maa_r = 1.0 - jnp.power(ddd, ratio_1_to_almost0)
    token_shift_state = jnp.zeros((1, C), dtype=jnp.bfloat16)   # matches torch param

    w_key = jax.random.normal(kk, (DIM_FFN, C), jnp.float32) / jnp.sqrt(C)
    w_receptance = jax.random.normal(kr, (C, C), jnp.float32) / jnp.sqrt(C)
    w_value = jax.random.normal(kv_key, (C, DIM_FFN), jnp.float32) / jnp.sqrt(DIM_FFN)

    x = jax.random.normal(kx, (B, T, C), jnp.float32)

    # --- f32 path vs f32 reference (torch semantics) ---
    out_f32 = rwkv_cmix_x060(x, token_shift_state, time_maa_k, time_maa_r,
                             w_key, w_receptance, w_value,
                             compute_dtype=jnp.float32, tile_m=64, tile_f=128)
    out_f32 = jax.block_until_ready(out_f32)
    ref_f32 = rwkv_cmix_x060_ref(x, token_shift_state, time_maa_k, time_maa_r,
                                 w_key, w_receptance, w_value,
                                 compute_dtype=jnp.float32)
    assert out_f32.shape == (B, T, C) and out_f32.dtype == jnp.float32
    assert jnp.allclose(out_f32, ref_f32, atol=1e-2, rtol=1e-2), "f32 path mismatch"

    # --- default fast path (bf16 MXU operands, f32 accumulation) vs matching ref ---
    out_bf16 = rwkv_cmix_x060(x, token_shift_state, time_maa_k, time_maa_r,
                              w_key, w_receptance, w_value,
                              tile_m=64, tile_f=128)      # compute_dtype=bf16 default
    out_bf16 = jax.block_until_ready(out_bf16)
    ref_bf16 = rwkv_cmix_x060_ref(x, token_shift_state, time_maa_k, time_maa_r,
                                  w_key, w_receptance, w_value,
                                  compute_dtype=jnp.bfloat16)
    assert jnp.allclose(out_bf16, ref_bf16, atol=3e-2, rtol=3e-2), "bf16 path mismatch"

    print("KERNEL_OK")
</pallas_src>

<mosaic_0001>
module attributes {stable_mosaic.version = 11 : i64} {
  func.func @_cmix_kernel(%arg0: i32, %arg1: i32, %arg2: memref<64x128xf32, #tpu.memory_space<vmem>>, %arg3: memref<64x128xf32, #tpu.memory_space<vmem>>, %arg4: memref<1x128xf32, #tpu.memory_space<vmem>>, %arg5: memref<1x128xf32, #tpu.memory_space<vmem>>, %arg6: memref<128x128xf32, #tpu.memory_space<vmem>>, %arg7: memref<128x128xf32, #tpu.memory_space<vmem>>, %arg8: memref<128x128xf32, #tpu.memory_space<vmem>>, %arg9: memref<64x128xf32, #tpu.memory_space<vmem>>, %arg10: memref<64x128xf32, #tpu.memory_space<vmem>>, %arg11: memref<64x128xf32, #tpu.memory_space<vmem>>) attributes {dimension_semantics = [#tpu.dimension_semantics<parallel>, #tpu.dimension_semantics<arbitrary>], iteration_bounds = array<i64: 2, 2>, scalar_prefetch = 0 : i64, scratch_operands = 2 : i64, tpu.core_type = #tpu.core_type<tc>, window_params = [{transform_indices = @transform_0, window_bounds = array<i64: 64, 128>}, {transform_indices = @transform_1, window_bounds = array<i64: 64, 128>}, {pipeline_mode = #tpu.pipeline_mode<synchronous>, transform_indices = @transform_2, window_bounds = array<i64: 1, 128>}, {pipeline_mode = #tpu.pipeline_mode<synchronous>, transform_indices = @transform_3, window_bounds = array<i64: 1, 128>}, {transform_indices = @transform_4, window_bounds = array<i64: 128, 128>}, {transform_indices = @transform_5, window_bounds = array<i64: 128, 128>}, {pipeline_mode = #tpu.pipeline_mode<synchronous>, transform_indices = @transform_6, window_bounds = array<i64: 128, 128>}, {transform_indices = @transform_7, window_bounds = array<i64: 64, 128>}]} {
    %c0_i32 = arith.constant 0 : i32
    %0 = arith.cmpi eq, %arg1, %c0_i32 : i32
    %1 = arith.extui %0 : i1 to i32
    %c0_i32_0 = arith.constant 0 : i32
    %2 = arith.cmpi ne, %1, %c0_i32_0 : i32
    scf.if %2 {
      %cst_17 = arith.constant 0.000000e+00 : f32
      %22 = vector.broadcast %cst_17 : f32 to vector<64x128xf32>
      %c0_18 = arith.constant 0 : index
      %c0_19 = arith.constant 0 : index
      %23 = vector.load %arg10[%c0_18, %c0_19] : memref<64x128xf32, #tpu.memory_space<vmem>>, vector<64x128xf32>
      tpu.vector_store %arg10[%c0_18, %c0_19], %22 {strides = array<i32>} : memref<64x128xf32, #tpu.memory_space<vmem>>, vector<64x128xf32>,
      %c0_20 = arith.constant 0 : index
      %c0_21 = arith.constant 0 : index
      %24 = vector.load %arg2[%c0_20, %c0_21] : memref<64x128xf32, #tpu.memory_space<vmem>>, vector<64x128xf32>
      %c0_22 = arith.constant 0 : index
      %c0_23 = arith.constant 0 : index
      %25 = vector.load %arg3[%c0_22, %c0_23] : memref<64x128xf32, #tpu.memory_space<vmem>>, vector<64x128xf32>
      %c0_24 = arith.constant 0 : index
      %c0_25 = arith.constant 0 : index
      %26 = vector.load %arg5[%c0_24, %c0_25] : memref<1x128xf32, #tpu.memory_space<vmem>>, vector<1x128xf32>
      %27 = vector.broadcast %26 : vector<1x128xf32> to vector<64x128xf32>
      %28 = arith.mulf %25, %27 : vector<64x128xf32>
      %29 = arith.addf %24, %28 : vector<64x128xf32>
      %c0_26 = arith.constant 0 : index
      %c0_27 = arith.constant 0 : index
      %30 = vector.load %arg8[%c0_26, %c0_27] : memref<128x128xf32, #tpu.memory_space<vmem>>, vector<128x128xf32>
      %cst_28 = arith.constant dense<0.000000e+00> : vector<64x128xf32>
      %31 = tpu.matmul %29, %30, %cst_28 {dimension_numbers = #tpu.dot_dimension_numbers<[1], [0], [0], [1], [0, 0, 1, 1], [], []>} : vector<64x128xf32>, vector<128x128xf32>, vector<64x128xf32> -> vector<64x128xf32>
      %32 = arith.negf %31 : vector<64x128xf32>
      %33 = math.exp %32 : vector<64x128xf32>
      %cst_29 = arith.constant 1.000000e+00 : f32
      %34 = vector.broadcast %cst_29 : f32 to vector<64x128xf32>
      %35 = arith.addf %34, %33 : vector<64x128xf32>
      %36 = arith.divf %34, %35 : vector<64x128xf32>
      %c0_30 = arith.constant 0 : index
      %c0_31 = arith.constant 0 : index
      %37 = vector.load %arg11[%c0_30, %c0_31] : memref<64x128xf32, #tpu.memory_space<vmem>>, vector<64x128xf32>
      tpu.vector_store %arg11[%c0_30, %c0_31], %36 {strides = array<i32>} : memref<64x128xf32, #tpu.memory_space<vmem>>, vector<64x128xf32>,
    } else {
    }
    %c0 = arith.constant 0 : index
    %c0_1 = arith.constant 0 : index
    %3 = vector.load %arg2[%c0, %c0_1] : memref<64x128xf32, #tpu.memory_space<vmem>>, vector<64x128xf32>
    %c0_2 = arith.constant 0 : index
    %c0_3 = arith.constant 0 : index
    %4 = vector.load %arg3[%c0_2, %c0_3] : memref<64x128xf32, #tpu.memory_space<vmem>>, vector<64x128xf32>
    %c0_4 = arith.constant 0 : index
    %c0_5 = arith.constant 0 : index
    %5 = vector.load %arg4[%c0_4, %c0_5] : memref<1x128xf32, #tpu.memory_space<vmem>>, vector<1x128xf32>
    %6 = vector.broadcast %5 : vector<1x128xf32> to vector<64x128xf32>
    %7 = arith.mulf %4, %6 : vector<64x128xf32>
    %8 = arith.addf %3, %7 : vector<64x128xf32>
    %c0_6 = arith.constant 0 : index
    %c0_7 = arith.constant 0 : index
    %9 = vector.load %arg6[%c0_6, %c0_7] : memref<128x128xf32, #tpu.memory_space<vmem>>, vector<128x128xf32>
    %cst = arith.constant dense<0.000000e+00> : vector<64x128xf32>
    %10 = tpu.matmul %8, %9, %cst {dimension_numbers = #tpu.dot_dimension_numbers<[1], [0], [0], [1], [0, 0, 1, 1], [], []>} : vector<64x128xf32>, vector<128x128xf32>, vector<64x128xf32> -> vector<64x128xf32>
    %cst_8 = arith.constant 0.000000e+00 : f32
    %11 = vector.broadcast %cst_8 : f32 to vector<64x128xf32>
    %12 = arith.maximumf %10, %11 : vector<64x128xf32>
    %13 = arith.mulf %12, %12 : vector<64x128xf32>
    %c0_9 = arith.constant 0 : index
    %c0_10 = arith.constant 0 : index
    %14 = vector.load %arg10[%c0_9, %c0_10] : memref<64x128xf32, #tpu.memory_space<vmem>>, vector<64x128xf32>
    %c0_11 = arith.constant 0 : index
    %c0_12 = arith.constant 0 : index
    %15 = vector.load %arg7[%c0_11, %c0_12] : memref<128x128xf32, #tpu.memory_space<vmem>>, vector<128x128xf32>
    %cst_13 = arith.constant dense<0.000000e+00> : vector<64x128xf32>
    %16 = tpu.matmul %13, %15, %cst_13 {dimension_numbers = #tpu.dot_dimension_numbers<[1], [0], [0], [1], [0, 0, 1, 1], [], []>} : vector<64x128xf32>, vector<128x128xf32>, vector<64x128xf32> -> vector<64x128xf32>
    %17 = arith.addf %14, %16 : vector<64x128xf32>
    %c0_14 = arith.constant 0 : index
    %c0_15 = arith.constant 0 : index
    %18 = vector.load %arg10[%c0_14, %c0_15] : memref<64x128xf32, #tpu.memory_space<vmem>>, vector<64x128xf32>
    tpu.vector_store %arg10[%c0_14, %c0_15], %17 {strides = array<i32>} : memref<64x128xf32, #tpu.memory_space<vmem>>, vector<64x128xf32>,
    %c1_i32 = arith.constant 1 : i32
    %19 = arith.cmpi eq, %arg1, %c1_i32 : i32
    %20 = arith.extui %19 : i1 to i32
    %c0_i32_16 = arith.constant 0 : i32
    %21 = arith.cmpi ne, %20, %c0_i32_16 : i32
    scf.if %21 {
      %c0_17 = arith.constant 0 : index
      %c0_18 = arith.constant 0 : index
      %22 = vector.load %arg11[%c0_17, %c0_18] : memref<64x128xf32, #tpu.memory_space<vmem>>, vector<64x128xf32>
      %c0_19 = arith.constant 0 : index
      %c0_20 = arith.constant 0 : index
      %23 = vector.load %arg10[%c0_19, %c0_20] : memref<64x128xf32, #tpu.memory_space<vmem>>, vector<64x128xf32>
      %24 = arith.mulf %22, %23 : vector<64x128xf32>
      %c0_21 = arith.constant 0 : index
      %c0_22 = arith.constant 0 : index
      %25 = vector.load %arg9[%c0_21, %c0_22] : memref<64x128xf32, #tpu.memory_space<vmem>>, vector<64x128xf32>
      tpu.vector_store %arg9[%c0_21, %c0_22], %24 {strides = array<i32>} : memref<64x128xf32, #tpu.memory_space<vmem>>, vector<64x128xf32>,
    } else {
    }
    return
  }
  func.func @transform_0(%arg0: i32, %arg1: i32) -> (i32, i32) {
    %c0_i32 = arith.constant 0 : i32
    %c0_i32_0 = arith.constant 0 : i32
    return %arg0, %c0_i32 : i32, i32
  }
  func.func @transform_1(%arg0: i32, %arg1: i32) -> (i32, i32) {
    %c0_i32 = arith.constant 0 : i32
    %c0_i32_0 = arith.constant 0 : i32
    return %arg0, %c0_i32 : i32, i32
  }
  func.func @transform_2(%arg0: i32, %arg1: i32) -> (i32, i32) {
    %c0_i32 = arith.constant 0 : i32
    %c0_i32_0 = arith.constant 0 : i32
    %c0_i32_1 = arith.constant 0 : i32
    return %c0_i32, %c0_i32_0 : i32, i32
  }
  func.func @transform_3(%arg0: i32, %arg1: i32) -> (i32, i32) {
    %c0_i32 = arith.constant 0 : i32
    %c0_i32_0 = arith.constant 0 : i32
    %c0_i32_1 = arith.constant 0 : i32
    return %c0_i32, %c0_i32_0 : i32, i32
  }
  func.func @transform_4(%arg0: i32, %arg1: i32) -> (i32, i32) {
    %c0_i32 = arith.constant 0 : i32
    %c0_i32_0 = arith.constant 0 : i32
    return %c0_i32, %arg1 : i32, i32
  }
  func.func @transform_5(%arg0: i32, %arg1: i32) -> (i32, i32) {
    %c0_i32 = arith.constant 0 : i32
    %c0_i32_0 = arith.constant 0 : i32
    return %arg1, %c0_i32 : i32, i32
  }
  func.func @transform_6(%arg0: i32, %arg1: i32) -> (i32, i32) {
    %c0_i32 = arith.constant 0 : i32
    %c0_i32_0 = arith.constant 0 : i32
    %c0_i32_1 = arith.constant 0 : i32
    return %c0_i32, %c0_i32_0 : i32, i32
  }
  func.func @transform_7(%arg0: i32, %arg1: i32) -> (i32, i32) {
    %c0_i32 = arith.constant 0 : i32
    %c0_i32_0 = arith.constant 0 : i32
    return %arg0, %c0_i32 : i32, i32
  }
}

</mosaic_0001>

<bundles_post_ra>
// kernel: tpu_custom_call.1
= control target key start
LH: loop header
LB: loop body
LE: loop exit
PB: predicated region body
PF: predicated region fallthrough
CT: control target
= control target key end

     0   :  { %s2610_s0 = inlined_call_operand.hbm [shape: f32[128,128], index: 0, kind: input, shape index: {}]   ;;  %s2611_s1 = inlined_call_operand.hbm [shape: f32[128,128], index: 1, kind: input, shape index: {}]   ;;  %s2612_s2 = inlined_call_operand.vmem [shape: f32[1,128], index: 2, kind: input, shape index: {}]   ;;  %s2613_s3 = inlined_call_operand.vmem [shape: f32[1,128], index: 3, kind: input, shape index: {}]   ;;  %s2614_s4 = inlined_call_operand.hbm [shape: f32[128,256], index: 4, kind: input, shape index: {}]   ;;  %s2615_s5 = inlined_call_operand.hbm [shape: f32[256,128], index: 5, kind: input, shape index: {}]   ;;  %s2616_s6 = inlined_call_operand.hbm [shape: f32[128,128], index: 6, kind: input, shape index: {}]   ;;  %s2617_s7 = inlined_call_operand.hbm [shape: f32[128,128], index: 7, kind: output, shape index: {}]  }
   0x1   :  { %2639 = sst [smem:[#allocation30_spill]] %s2611_s1 }
   0x2   :  { %2640 = sst [smem:[#allocation31_spill]] %s2612_s2 }
   0x3   :  { %2641 = sst [smem:[#allocation32_spill]] %s2613_s3 }
   0x4   :  { %2642 = sst [smem:[#allocation33_spill]] %s2616_s6 }
   0x5   :  { %2643 = sst [smem:[#allocation34_spill]] %s2617_s7 }
   0x6   :  { %12 = vsyncpa [#allocation5], 0 }
   0x7   :  { %14 = vsyncpa [#allocation5 + $0x1], 0 }
   0x8   :  { %15 = vsyncpa [#allocation8], 0 }
   0x9   :  { %17 = vsyncpa [#allocation8 + $0x1], 0 }
   0xa   :  { %18 = vsyncpa [#allocation11], 0 }
   0xb   :  { %20 = vsyncpa [#allocation11 + $0x1], 0 }
   0xc   :  { %21 = vsyncpa [#allocation6], 0 }
   0xd   :  { %23 = vsyncpa [#allocation6 + $0x1], 0  ;;  %s2067_s24 = smov 0   ;;  %s2069_s25 = smov 0  }
   0xe   :  { %s2071_s26 = smov 0   ;;  %s2073_s27 = smov 0  }
   0xf   :  { %s2075_s28 = smov 0   ;;  %s2077_s29 = smov 0  }
  0x10   :  { %s2079_s30 = smov 0   ;;  %s2081_s8 = smov 0  }
  0x11   :  { %s2083_s9 = smov 0   ;;  %s2085_s10 = smov 0  }
  0x12   :  { %s2087_s11 = smov 0  }
  0x13 LB: > { %2644 = sst [smem:[#allocation20_spill]] %s1985_s27  ;;  %s2121_s12 = sadd.s32 4294967295, %s2013_s11   ;;  %s2013_s11 = sphi %s2087_s11, %s29_s11   ;;  %s2009_s10 = sphi %s2085_s10, %s2703_s10   ;;  %s2005_s9 = sphi %s2083_s9, %s2702_s9   ;;  %s2001_s8 = sphi %s2081_s8, %s2701_s8   ;;  %s1997_s30 = sphi %s2079_s30, %s2700_s30   ;;  %s1993_s29 = sphi %s2077_s29, %s2699_s29   ;;  %s1989_s28 = sphi %s2075_s28, %s2698_s28   ;;  %s1985_s27 = sphi %s2073_s27, %s2697_s27   ;;  %s1981_s26 = sphi %s2071_s26, %s2696_s26   ;;  %s1977_s25 = sphi %s2069_s25, %s2695_s25   ;;  %s1973_s24 = sphi %s2067_s24, %s2694_s24  }
  0x14   : > { %2645 = sst [smem:[#allocation21_spill]] %s1997_s30  ;;  %s1202_s13 = sadd.s32 4294967294, %s2013_s11  }
  0x15   : > { %2646 = sst [smem:[#allocation22_spill]] %s2001_s8  ;;  %p61_p0 = scmp.ne.s32.totalorder %s1989_s28, %s1985_s27 }
  0x16   : > { %p2620_p1 = scmp.eq.s32.totalorder %s2121_s12, 0  ;;  %p155_p4 = scmp.ne.s32.totalorder %s1977_s25, %s1973_s24 }
  0x17   : > { %p232_p6 = scmp.eq.s32.totalorder %s1202_s13, 3  ;;  %p1203_p8 = scmp.ge.s32.totalorder %s2013_s11, 1 }
  0x18   : > { %p2132_p3 = por %p2620_p1, %p61_p0  ;;  %p2140_p7 = por %p155_p4, %p2620_p1 }
  0x19   : > { %p2145_p9 = por %p232_p6, %p61_p0  ;;  %p239_p10 = scmp.lt.s32.totalorder %s2013_s11, 5 }
  0x1a   : > { %s2647_s15 = scalar_select %p2132_p3, 1, 0 }
  0x1b   : > { %s2648_s16 = scalar_select %p2140_p7, 1, 0 }
  0x1c   : > { %s2650_s17 = scalar_select %p2145_p9, 1, 0 }
  0x1d   : > { %2649 = sst [smem:[#allocation23_spill]] %s2648_s16  ;;  %p2150_p11 = pnand %p1203_p8, %p239_p10 }
  0x1e   : > { %2651 = sst [smem:[#allocation24_spill]] %s2650_s17  ;;  %s2015_s19 = smov [#allocation12]  }
  0x1f   : > { %s2652_s18 = scalar_select %p2150_p11, 1, 0 }
  0x20   : > { %s257_s20 = sshll.u32 %s2015_s19, 4  ;;  %p1575_p12 = pneg %p2150_p11  ;;  %s258_s20 = int_to_ptr.vmem [resolvable:$true] %s257_s20 }
  0x21   : > { %s2654_s6 = sld [smem:[#allocation33_spill]] }
  0x22   : > { %p2158_p13 = pnand %p1575_p12, %p2620_p1 }
  0x24   : > { %p1729_p4 = pneg %p2158_p13 }
  0x27   : > { %s1727_s24 = scalar_lea.hbm %s2654_s6, 2048 }
  0x28   : > { %p1728_p0 = scmp.ne.s32.totalorder %s2654_s6, %s1727_s24  ;;  %p1734_p10 = scmp.lt.u32.totalorder %s1727_s24, %s2654_s6 }
  0x2a   : > { %p1730_p6 = pnand %p1729_p4, %p1728_p0 }
  0x2c   : > { %p1731_p8 = pneg %p1730_p6 }
  0x2e   : > { %p1736_p12 = pnand %p1734_p10, %p1731_p8 }
  0x30   : > { %1739 = shalt.err (!%p1736_p12)
}
  0x31   : > { %s1740_s27 = scalar_lea.vmem %s258_s20, 2048  ;;  %p1748_p9 = scmp.lt.s32.totalorder %s258_s20, %s258_s20 }
  0x32   : > { %p1741_p1 = scmp.ne.s32.totalorder %s258_s20, %s1740_s27  ;;  %p1749_p7 = scmp.lt.s32.totalorder %s1740_s27, %s1740_s27 }
  0x34   : > { %p1743_p5 = pnand %p1741_p1, %p1729_p4  ;;  %p1750_p3 = por %p1749_p7, %p1748_p9 }
  0x36   : > { %p1744_p2 = pneg %p1743_p5 }
  0x38   : > { %p1751_p11 = pnand %p1750_p3, %p1744_p2 }
  0x3a   : > { %1754 = shalt.err (!%p1751_p11)
}
  0x3b   : > { %s2624_s14 = smov 128   ;;  %s2626_s17 = smov 8  }
  0x3c   : > { %1578 = dma.hbm_to_vmem [thread:$0]  (!%p2158_p13), %s2654_s6, 2048, %s258_s20, [#allocation11], %s2624_s14, %s2624_s14, %s2626_s17  }
  0x3d   : > { %s38_s23 = sadd.s32 1, %s2005_s9  ;;  %s41_s24 = sadd.s32 1, %s2009_s10 }
  0x3e   : > { %p39_p1 = scmp.ge.s32.totalorder %s38_s23, 2  ;;  %s48_s13 = sadd.s32 1, %s1993_s29 }
  0x3f   : > { %p55_p2 = scmp.ne.s32.totalorder %s1993_s29, %s1989_s28  ;;  %p56_p3 = scmp.eq.s32.totalorder %s2013_s11, 0 }
  0x40   : > { %s2705_s23 = smov (%p39_p1, %s38_s23), 0  ;;  %s2707_s24 = smov (!%p39_p1, %s41_s24), %s2009_s10 }
  0x41   : > { %2655 = sst [smem:[#allocation25_spill]] %s2705_s23  ;;  %s139_s21 = ssub.s32 %s2005_s9, %s2705_s23 }
  0x42   : > { %p43_p5 = scmp.ge.s32.totalorder %s2707_s24, 2  ;;  %p140_p7 = scmp.eq.s32.totalorder %s139_s21, 0 }
  0x43   : > { %p57_p9 = por %p56_p3, %p55_p2  ;;  %p2656_p11 = scmp.ne.s32.totalorder %s1981_s26, %s1977_s25 }
  0x44   : > { %s2709_s24 = smov (%p43_p5, %s2707_s24), 0  ;;  %s2659_s19 = sadd.s32 1, %s1981_s26 }
  0x45   : > { %p2195_p13 = por %p2656_p11, %p56_p3  ;;  %2658 = sst [smem:[#allocation26_spill]] %s2709_s24 }
  0x46   : > { %s2204_s27 = scalar_select %p140_p7, %s1981_s26, %s2659_s19  }
  0x47   : > { %s45_s22 = ssub.s32 %s2009_s10, %s2709_s24  ;;  %p2661_p0 = scmp.eq.s32.totalorder %s2121_s12, 3 }
  0x48   : > { %2660 = sst [smem:[#allocation27_spill]] %s2204_s27  ;;  %p46_p6 = scmp.eq.s32.totalorder %s45_s22, 0 }
  0x49   : > { %p2210_p4 = por %p2661_p0, %p55_p2  ;;  %p1597_p8 = scmp.lt.s32.totalorder %s2013_s11, 4 }
  0x4a   : > { %s2631_s21 = sand.u32 1, %s1993_s29   ;;  %s2634_s17 = sshll.u32 %s2009_s10, 10 }
  0x4b   : > { %s2662_s14 = scalar_select %p2210_p4, 1, 0 }
  0x4c   : > { %s2218_s6 = scalar_select %p46_p6, %s1993_s29, %s48_s13  }
  0x4d   : > { %2663 = sst [smem:[#allocation28_spill]] %s2662_s14  ;;  %s2222_s23 = sshll.u32 %s2631_s21, 6 }
  0x4e   : > { %2664 = sst [smem:[#allocation29_spill]] %s2218_s6  ;;  %p2224_p10 = pnand %p1597_p8, %p57_p9 }
  0x4f   : > { %s2635_s24 = sand.u32 1, %s2013_s11   ;;  %s2666_s1 = sld [smem:[#allocation30_spill]] }
  0x50   : > { %s296_s13 = scalar_lea.vmem [#allocation7], %s2222_s23  ;;  %p2241_p12 = pnand %p1597_p8, %p2195_p13 }
  0x51   : > { %s303_s21 = sshll.u32 %s296_s13, 4  ;;  %s2247_s14 = scalar_lea.sflag [#allocation8], %s2635_s24  ;;  %s2237_s21 = int_to_ptr.vmem [resolvable:$true] %s303_s21 }
  0x52   : > { %p1757_p2 = pneg %p2224_p10 }
  0x55   : > { %s2234_s22 = scalar_lea.hbm %s2666_s1, %s2634_s17  ;;  %s1760_s13 = scalar_lea.hbm %s2666_s1, 2048 }
  0x56   : > { %s1755_s8 = scalar_lea.hbm %s2234_s22, 1024  ;;  %p1761_p7 = scmp.lt.u32.totalorder %s2234_s22, %s2666_s1 }
  0x57   : > { %p1756_p1 = scmp.ne.s32.totalorder %s2234_s22, %s1755_s8  ;;  %p1762_p9 = scmp.lt.u32.totalorder %s1760_s13, %s1755_s8 }
  0x58   : > { %p1764_p13 = scmp.lt.u32.totalorder %s1755_s8, %s2234_s22 }
  0x59   : > { %p1758_p3 = pnand %p1757_p2, %p1756_p1  ;;  %p1763_p11 = por %p1762_p9, %p1761_p7 }
  0x5b   : > { %p1759_p5 = pneg %p1758_p3  ;;  %p1765_p0 = por %p1764_p13, %p1763_p11 }
  0x5d   : > { %p1766_p6 = pnand %p1765_p0, %p1759_p5 }
  0x5f   : > { %1769 = shalt.err (!%p1766_p6)
}
  0x60   : > { %s1770_s24 = scalar_lea.vmem %s2237_s21, 1024  ;;  %s2018_s7 = smov [#allocation7]  }
  0x61   : > { %p1771_p8 = scmp.ne.s32.totalorder %s2237_s21, %s1770_s24  ;;  %s1775_s27 = sshll.u32 %s2018_s7, 4  ;;  %s1776_s27 = int_to_ptr.vmem [resolvable:$false] %s1775_s27 }
  0x62   : > { %s1777_s17 = scalar_lea.vmem %s1776_s27, 2048  ;;  %p1778_p4 = scmp.lt.s32.totalorder %s2237_s21, %s1776_s27 }
  0x63   : > { %p1773_p1 = pnand %p1771_p8, %p1757_p2  ;;  %p1779_p7 = scmp.lt.s32.totalorder %s1777_s17, %s1770_s24 }
  0x65   : > { %p1774_p3 = pneg %p1773_p1  ;;  %p1780_p9 = por %p1779_p7, %p1778_p4 }
  0x67   : > { %p1781_p11 = pnand %p1780_p9, %p1774_p3 }
  0x69   : > { %1784 = shalt.err (!%p1781_p11)
}
  0x6a   : > { %s2668_s8 = smov 8   ;;  %s2669_s13 = smov 128  }
  0x6b   : > { %1585 = dma.hbm_to_vmem [thread:$0]  (!%p2224_p10), %s2234_s22, 1024, %s2237_s21, %s2247_s14, %s2669_s13, %s2669_s13, %s2668_s8  }
  0x6c   : > { %s2670_s20 = sshll.u32 %s2009_s10, 10  ;;  %s275_s17 = scalar_lea.vmem [#allocation4], %s2222_s23 }
  0x6d   : > { %s2283_s27 = scalar_lea.hbm %s2610_s0, %s2670_s20  ;;  %s282_s1 = sshll.u32 %s275_s17, 4  ;;  %s2286_s1 = int_to_ptr.vmem [resolvable:$true] %s282_s1 }
  0x6e   : > { %s315_s2 = sand.u32 1, %s1981_s26   ;;  %s2671_s3 = sand.u32 1, %s1993_s29  }
  0x6f   : > { %s2291_s30 = scalar_lea.sflag [#allocation5], %s2671_s3  ;;  %s1785_s16 = scalar_lea.hbm %s2283_s27, 1024 }
  0x70   : > { %p1786_p4 = scmp.ne.s32.totalorder %s2283_s27, %s1785_s16  ;;  %s1790_s20 = scalar_lea.hbm %s2610_s0, 2048 }
  0x71   : > { %p1791_p0 = scmp.lt.u32.totalorder %s2283_s27, %s2610_s0  ;;  %p1792_p6 = scmp.lt.u32.totalorder %s1790_s20, %s1785_s16 }
  0x72   : > { %p1788_p5 = pnand %p1786_p4, %p1757_p2  ;;  %p1794_p1 = scmp.lt.u32.totalorder %s1785_s16, %s2283_s27 }
  0x73   : > { %p1793_p8 = por %p1792_p6, %p1791_p0 }
  0x74   : > { %p1789_p13 = pneg %p1788_p5 }
  0x75   : > { %p1795_p3 = por %p1794_p1, %p1793_p8 }
  0x77   : > { %p1796_p7 = pnand %p1795_p3, %p1789_p13 }
  0x79   : > { %1799 = shalt.err (!%p1796_p7)
}
  0x7a   : > { %s1800_s3 = scalar_lea.vmem %s2286_s1, 1024  ;;  %s2019_s23 = smov [#allocation4]  }
  0x7b   : > { %p1801_p9 = scmp.ne.s32.totalorder %s2286_s1, %s1800_s3  ;;  %s1805_s17 = sshll.u32 %s2019_s23, 4  ;;  %s1806_s17 = int_to_ptr.vmem [resolvable:$false] %s1805_s17 }
  0x7c   : > { %s1807_s21 = scalar_lea.vmem %s1806_s17, 2048  ;;  %p1808_p5 = scmp.lt.s32.totalorder %s2286_s1, %s1806_s17 }
  0x7d   : > { %p1803_p11 = pnand %p1801_p9, %p1757_p2  ;;  %p1809_p0 = scmp.lt.s32.totalorder %s1807_s21, %s1800_s3 }
  0x7f   : > { %p1804_p4 = pneg %p1803_p11  ;;  %p1810_p6 = por %p1809_p0, %p1808_p5 }
  0x81   : > { %p1811_p8 = pnand %p1810_p6, %p1804_p4 }
  0x83   : > { %1814 = shalt.err (!%p1811_p8)
}
  0x84   : > { %1582 = dma.hbm_to_vmem [thread:$0]  (!%p2224_p10), %s2283_s27, 1024, %s2286_s1, %s2291_s30, %s2669_s13, %s2669_s13, %s2668_s8  }
  0x85   : > { %s2322_s16 = sshll.u32 %s315_s2, 7  ;;  %s1213_s22 = sshll.u32 %s2005_s9, 7 }
  0x86   : > { %s2328_s19 = scalar_lea.hbm %s2614_s4, %s1213_s22  ;;  %s317_s24 = scalar_lea.vmem [#allocation9], %s2322_s16 }
  0x87   : > { %s323_s3 = sshll.u32 %s317_s24, 4  ;;  %s1815_s23 = scalar_lea.hbm %s2328_s19, 2048  ;;  %s2331_s3 = int_to_ptr.vmem [resolvable:$true] %s323_s3 }
  0x88   : > { %p1816_p10 = scmp.ne.s32.totalorder %s2328_s19, %s1815_s23  ;;  %p1817_p2 = pneg %p2241_p12 }
  0x89   : > { %s1820_s30 = scalar_lea.hbm %s2614_s4, 4096  ;;  %p1821_p3 = scmp.lt.u32.totalorder %s2328_s19, %s2614_s4 }
  0x8a   : > { %p1818_p13 = pnand %p1817_p2, %p1816_p10  ;;  %p1822_p7 = scmp.lt.u32.totalorder %s1820_s30, %s1815_s23 }
  0x8b   : > { %p1824_p11 = scmp.lt.u32.totalorder %s1815_s23, %s2328_s19 }
  0x8c   : > { %p1819_p1 = pneg %p1818_p13  ;;  %p1823_p9 = por %p1822_p7, %p1821_p3 }
  0x8e   : > { %p1825_p4 = por %p1824_p11, %p1823_p9 }
  0x90   : > { %p1826_p5 = pnand %p1825_p4, %p1819_p1 }
  0x92   : > { %1829 = shalt.err (!%p1826_p5)
}
  0x93   : > { %s1830_s21 = scalar_lea.vmem %s2331_s3, 2048  ;;  %s2020_s22 = smov [#allocation9]  }
  0x94   : > { %p1831_p0 = scmp.ne.s32.totalorder %s2331_s3, %s1830_s21  ;;  %s1835_s20 = sshll.u32 %s2020_s22, 4  ;;  %s1836_s20 = int_to_ptr.vmem [resolvable:$false] %s1835_s20 }
  0x95   : > { %s1837_s7 = scalar_lea.vmem %s1836_s20, 4096  ;;  %p1838_p10 = scmp.lt.s32.totalorder %s2331_s3, %s1836_s20 }
  0x96   : > { %p1833_p6 = pnand %p1831_p0, %p1817_p2  ;;  %p1839_p13 = scmp.lt.s32.totalorder %s1837_s7, %s1830_s21 }
  0x98   : > { %p1834_p8 = pneg %p1833_p6  ;;  %p1840_p3 = por %p1839_p13, %p1838_p10 }
  0x9a   : > { %p1841_p7 = pnand %p1840_p3, %p1834_p8 }
  0x9c   : > { %1844 = shalt.err (!%p1841_p7)
}
  0x9d   : > { %s2021_s24 = smov 256   ;;  %s1243_s23 = sshll.u32 %s2005_s9, 11 }
  0x9e   : > { %1588 = dma.hbm_to_vmem [thread:$0]  (!%p2241_p12), %s2328_s19, 2048, %s2331_s3, %s2247_s14, %s2021_s24, %s2669_s13, %s2668_s8  }
  0x9f   : > { %s337_s1 = scalar_lea.vmem [#allocation10], %s2322_s16  ;;  %s2366_s17 = scalar_lea.hbm %s2615_s5, %s1243_s23 }
  0xa0   : > { %s344_s2 = sshll.u32 %s337_s1, 4  ;;  %s2672_s21 = sand.u32 1, %s2013_s11   ;;  %s2368_s2 = int_to_ptr.vmem [resolvable:$true] %s344_s2 }
  0xa1   : > { %s2372_s22 = scalar_lea.sflag [#allocation11], %s2672_s21  ;;  %s1845_s20 = scalar_lea.hbm %s2366_s17, 2048 }
  0xa2   : > { %p1846_p1 = scmp.ne.s32.totalorder %s2366_s17, %s1845_s20  ;;  %s1850_s19 = scalar_lea.hbm %s2615_s5, 4096 }
  0xa3   : > { %p1851_p4 = scmp.lt.u32.totalorder %s2366_s17, %s2615_s5  ;;  %p1852_p5 = scmp.lt.u32.totalorder %s1850_s19, %s1845_s20 }
  0xa4   : > { %p1848_p9 = pnand %p1846_p1, %p1817_p2  ;;  %p1854_p6 = scmp.lt.u32.totalorder %s1845_s20, %s2366_s17 }
  0xa5   : > { %p1853_p0 = por %p1852_p5, %p1851_p4 }
  0xa6   : > { %p1849_p11 = pneg %p1848_p9 }
  0xa7   : > { %p1855_p8 = por %p1854_p6, %p1853_p0 }
  0xa9   : > { %p1856_p10 = pnand %p1855_p8, %p1849_p11 }
  0xab   : > { %1859 = shalt.err (!%p1856_p10)
}
  0xac   : > { %s1860_s24 = scalar_lea.vmem %s2368_s2, 2048  ;;  %s2022_s23 = smov [#allocation10]  }
  0xad   : > { %p1861_p13 = scmp.ne.s32.totalorder %s2368_s2, %s1860_s24  ;;  %s1865_s1 = sshll.u32 %s2022_s23, 4  ;;  %s1866_s1 = int_to_ptr.vmem [resolvable:$false] %s1865_s1 }
  0xae   : > { %s1867_s30 = scalar_lea.vmem %s1866_s1, 4096  ;;  %p1868_p1 = scmp.lt.s32.totalorder %s2368_s2, %s1866_s1 }
  0xaf   : > { %p1863_p3 = pnand %p1861_p13, %p1817_p2  ;;  %p1869_p9 = scmp.lt.s32.totalorder %s1867_s30, %s1860_s24 }
  0xb1   : > { %p1864_p7 = pneg %p1863_p3  ;;  %p1870_p4 = por %p1869_p9, %p1868_p1 }
  0xb3   : > { %p1871_p5 = pnand %p1870_p4, %p1864_p7 }
  0xb5   : > { %1874 = shalt.err (!%p1871_p5)
}
  0xb6   : > { %1591 = dma.hbm_to_vmem [thread:$0]  (!%p2241_p12), %s2366_s17, 2048, %s2368_s2, %s2372_s22, %s2669_s13, %s2669_s13, %s2668_s8  }
  0xb7   : > { %p2673_p2 = scmp.ne.s32.totalorder %s2652_s18, 0 }
  0xb8   : > { %s2404_s27 = sand.u32 (!%p2673_p2), 1, %s1989_s28   ;;  %p2674_p11 = scmp.ne.s32.totalorder (!%p2673_p2), %s2647_s15, 0 }
  0xb9   : > { %356 = sbr.rel (%p2673_p2) target bundleno = 1017 (0x3f9), region = 48  ;;  %s1218_s21 = sshll.u32 (!%p2673_p2), %s2404_s27, 6 }
  0xba   : > { %s359_s20 = scalar_lea.sflag (!%p2673_p2), [#allocation5], %s2404_s27  ;;  %s2408_s14 = scalar_lea.vmem (!%p2673_p2), [#allocation4], %s1218_s21 }
  0xc0   : > { %1948 = dma.done.wait (%p2674_p11), %s359_s20, 1024  }
  0xc1   : > { %1950 = vsyncadd (%p2674_p11), %s359_s20, 4294966272  ;;  %s367_s6 = sand.u32 1, %s2121_s12   ;;  %s2415_s8 = scalar_lea.vmem [#allocation7], %s1218_s21 }
  0xc2   : > { %s368_s18 = scalar_lea.sflag [#allocation8], %s367_s6 }
  0xc3   : > { %1952 = dma.done.wait (%p2674_p11), %s368_s18, 1024  }
  0xc4   : > { %1954 = vsyncadd (%p2674_p11), %s368_s18, 4294966272  ;;  %s2675_s13 = sld [smem:[#allocation23_spill]]  ;;  %s378_s2 = sand.u32 1, %s1977_s25  }
  0xc5   : > { %s1220_s17 = sshll.u32 %s378_s2, 7 }
  0xc6   : > { %s2422_s22 = scalar_lea.vmem [#allocation9], %s1220_s17 }
  0xca   : > { %p2676_p12 = scmp.ne.s32.totalorder %s2675_s13, 0 }
  0xcc   : > { %1956 = dma.done.wait (%p2676_p12), %s368_s18, 2048  }
  0xcd   : > { %1958 = vsyncadd (%p2676_p12), %s368_s18, 4294965248  ;;  %s386_s16 = scalar_lea.sflag [#allocation11], %s367_s6  ;;  %s2428_s19 = scalar_lea.vmem [#allocation10], %s1220_s17 }
  0xce   : > { %1960 = dma.done.wait (%p2676_p12), %s386_s16, 2048  }
  0xcf   : > { %1962 = vsyncadd (%p2676_p12), %s386_s16, 4294965248  ;;  %p2677_p0 = scmp.eq.s32.totalorder %s2121_s12, 0 }
  0xd1   : > { %1964 = dma.done.wait (%p2677_p0), [#allocation11], 2048   ;;  %p2678_p6 = pmov %p2677_p0 }
  0xd2   : > { %s2438_s15 = scalar_lea.vmem [#allocation13], %s1218_s21  ;;  %s2679_s3 = sld [smem:[#allocation21_spill]] }
  0xd3   : > { %1966 = vsyncadd (%p2678_p6), [#allocation11], 4294965248 }
  0xd8   : > { %p1224_p8 = scmp.ne.s32.totalorder %s2679_s3, 0 }
  0xd9   : > { %v494_v0 = vld [vmem:[#allocation12] sm:$0xff] (!%p1224_p8)  ;;  %v495_v1 = vld [vmem:[#allocation12 + $0x8] sm:$0xff] (!%p1224_p8)  ;;  %v496_v2 = vld [vmem:[#allocation12 + $0x10] sm:$0xff] (!%p1224_p8)  ;;  %v2023_v3 = vmov (!%p1224_p8), 0.0   ;;  %s2680_s24 = sld [smem:[#allocation32_spill]] (!%p1224_p8) }
  0xda   : > { %446 = sbr.rel (%p1224_p8) target bundleno = 498 (0x1f2), region = 72  ;;  %447 = vst [vmem:[#allocation2] sm:$0xff] (!%p1224_p8), %v2023_v3  ;;  %448 = vst [vmem:[#allocation2 + $0x8] sm:$0xff] (!%p1224_p8), %v2023_v3  ;;  %v1449_v4 = vpack.c.bf16 (!%p1224_p8), %v495_v1, %v494_v0  ;;  %v497_v5 = vld [vmem:[#allocation12 + $0x18] sm:$0xff] (!%p1224_p8)  ;;  %v498_v7 = vld [vmem:[#allocation12 + $0x20] sm:$0xff] (!%p1224_p8) }
  0xdb   : > { %449 = vst [vmem:[#allocation2 + $0x10] sm:$0xff] (!%p1224_p8), %v2023_v3  ;;  %450 = vst [vmem:[#allocation2 + $0x18] sm:$0xff] (!%p1224_p8), %v2023_v3  ;;  %v1453_v6 = vpack.c.bf16 (!%p1224_p8), %v497_v5, %v496_v2  ;;  %v499_v8 = vld [vmem:[#allocation12 + $0x28] sm:$0xff] (!%p1224_p8)  ;;  %v500_v9 = vld [vmem:[#allocation12 + $0x30] sm:$0xff] (!%p1224_p8) }
  0xdc   : > { %451 = vst [vmem:[#allocation2 + $0x20] sm:$0xff] (!%p1224_p8), %v2023_v3  ;;  %452 = vst [vmem:[#allocation2 + $0x28] sm:$0xff] (!%p1224_p8), %v2023_v3  ;;  %1450 = vmatprep.subr.bf16.mxu0 (!%p1224_p8), %v1449_v4  ;;  %1545 = vmatprep.subr.bf16.mxu1 (!%p1224_p8), %v1449_v4  ;;  %v1457_v10 = vpack.c.bf16 (!%p1224_p8), %v499_v8, %v498_v7  ;;  %v501_v11 = vld [vmem:[#allocation12 + $0x38] sm:$0xff] (!%p1224_p8)  ;;  %v455_v12 = vld [vmem:[%s2408_s14] sm:$0xff] (!%p1224_p8) }
  0xdd   : > { %453 = vst [vmem:[#allocation2 + $0x30] sm:$0xff] (!%p1224_p8), %v2023_v3  ;;  %454 = vst [vmem:[#allocation2 + $0x38] sm:$0xff] (!%p1224_p8), %v2023_v3  ;;  %1452 = vmatpush3.bf16.msra.mxu0 (!%p1224_p8), %v1449_v4  ;;  %1553 = vmatpush3.bf16.msra.mxu1 (!%p1224_p8), %v1449_v4  ;;  %v463_v13 = vld [vmem:[%s2415_s8] sm:$0xff] (!%p1224_p8)  ;;  %v1461_v19 = vpack.c.bf16 (!%p1224_p8), %v501_v11, %v500_v9  ;;  %v503_v23 = vld [vmem:[#allocation12 + $0x48] sm:$0xff] (!%p1224_p8) }
  0xde   : > { %1454 = vmatprep.subr.bf16.mxu0 (!%p1224_p8), %v1453_v6  ;;  %1546 = vmatprep.subr.bf16.mxu1 (!%p1224_p8), %v1453_v6  ;;  %v459_v15 = vld [vmem:[%s2408_s14 + $0x20] sm:$0xff] (!%p1224_p8)  ;;  %v504_v25 = vld [vmem:[#allocation12 + $0x50] sm:$0xff] (!%p1224_p8)  ;;  %v505_v26 = vld [vmem:[#allocation12 + $0x58] sm:$0xff] (!%p1224_p8) }
  0xdf   : > { %v2446_v14 = vld [vmem:[%s2680_s24] ss:$0 sm:$0xff] (!%p1224_p8)  ;;  %v1469_v27 = vpack.c.bf16 (!%p1224_p8), %v505_v26, %v504_v25  ;;  %v507_v29 = vld [vmem:[#allocation12 + $0x68] sm:$0xff] (!%p1224_p8)  ;;  %v508_v31 = vld [vmem:[#allocation12 + $0x70] sm:$0xff] (!%p1224_p8) }
  0xe0   : > { %v467_v16 = vld [vmem:[%s2415_s8 + $0x20] sm:$0xff] (!%p1224_p8)  ;;  %v478_v17 = vmul.f32 (!%p1224_p8), %v2446_v14, %v463_v13  ;;  %v509_v32 = vld [vmem:[#allocation12 + $0x78] sm:$0xff] (!%p1224_p8)  ;;  %v464_v33 = vld [vmem:[%s2415_s8 + $0x8] sm:$0xff] (!%p1224_p8) }
  0xe1   : > { %v482_v18 = vmul.f32 %v2446_v14, %v467_v16  ;;  %1456 = vmatpush3.bf16.msra.mxu0 %v1453_v6  ;;  %1554 = vmatpush3.bf16.msra.mxu1 %v1453_v6  ;;  %v502_v22 = vld [vmem:[#allocation12 + $0x40] sm:$0xff]  ;;  %v468_v34 = vld [vmem:[%s2415_s8 + $0x28] sm:$0xff]  ;;  %v1477_v35 = vpack.c.bf16 %v509_v32, %v508_v31  ;;  %v465_v36 = vld [vmem:[%s2415_s8 + $0x10] sm:$0xff]  ;;  %v479_v39 = vmul.f32 %v2446_v14, %v464_v33 }
  0xe2   : > { %1458 = vmatprep.subr.bf16.mxu0 %v1457_v10  ;;  %1547 = vmatprep.subr.bf16.mxu1 %v1457_v10  ;;  %v486_v20 = vadd.f32 %v478_v17, %v455_v12  ;;  %v1465_v24 = vpack.c.bf16 %v503_v23, %v502_v22  ;;  %v506_v28 = vld [vmem:[#allocation12 + $0x60] sm:$0xff]  ;;  %v469_v37 = vld [vmem:[%s2415_s8 + $0x30] sm:$0xff]  ;;  %v456_v38 = vld [vmem:[%s2408_s14 + $0x8] sm:$0xff]  ;;  %v483_v40 = vmul.f32 %v2446_v14, %v468_v34 }
  0xe3   : > { %v490_v21 = vadd.f32 %v482_v18, %v459_v15  ;;  %v1473_v30 = vpack.c.bf16 %v507_v29, %v506_v28  ;;  %v460_v41 = vld [vmem:[%s2408_s14 + $0x28] sm:$0xff]  ;;  %v480_v42 = vmul.f32 %v2446_v14, %v465_v36  ;;  %v484_v43 = vmul.f32 %v2446_v14, %v469_v37  ;;  %v466_v44 = vld [vmem:[%s2415_s8 + $0x18] sm:$0xff]  ;;  %v457_v46 = vld [vmem:[%s2408_s14 + $0x10] sm:$0xff] }
  0xe4   : > { %1349 = vmatprep.mubr.f32.mxu0 %v486_v20  ;;  %v470_v45 = vld [vmem:[%s2415_s8 + $0x38] sm:$0xff]  ;;  %v461_v47 = vld [vmem:[%s2408_s14 + $0x30] sm:$0xff]  ;;  %v487_v48 = vadd.f32 %v479_v39, %v456_v38  ;;  %v491_v49 = vadd.f32 %v483_v40, %v460_v41  ;;  %v481_v50 = vmul.f32 %v2446_v14, %v466_v44 }
  0xe5   : > { %1355 = vmatprep.mubr.f32.mxu1 %v490_v21  ;;  %1460 = vmatpush3.bf16.msra.mxu0 %v1457_v10  ;;  %v485_v51 = vmul.f32 %v2446_v14, %v470_v45  ;;  %v488_v52 = vadd.f32 %v480_v42, %v457_v46  ;;  %v492_v53 = vadd.f32 %v484_v43, %v461_v47  ;;  %v458_v54 = vld [vmem:[%s2408_s14 + $0x18] sm:$0xff] }
  0xe6   : > { %1555 = vmatpush3.bf16.msra.mxu1 %v1457_v10  ;;  %1462 = vmatprep.subr.bf16.mxu0 %v1461_v19  ;;  %v462_v55 = vld [vmem:[%s2408_s14 + $0x38] sm:$0xff]  ;;  %v489_v56 = vadd.f32 %v481_v50, %v458_v54 }
  0xe7   : > { %1548 = vmatprep.subr.bf16.mxu1 %v1461_v19  ;;  %v493_v57 = vadd.f32 %v485_v51, %v462_v55 }
  0xe9   : > { %1464 = vmatpush3.bf16.msra.mxu0 %v1461_v19 }
  0xea   : > { %1556 = vmatpush3.bf16.msra.mxu1 %v1461_v19  ;;  %1466 = vmatprep.subr.bf16.mxu0 %v1465_v24 }
  0xeb   : > { %1549 = vmatprep.subr.bf16.mxu1 %v1465_v24 }
  0xed   : > { %1468 = vmatpush3.bf16.msra.mxu0 %v1465_v24 }
  0xee   : > { %1557 = vmatpush3.bf16.msra.mxu1 %v1465_v24  ;;  %1470 = vmatprep.subr.bf16.mxu0 %v1469_v27 }
  0xef   : > { %1550 = vmatprep.subr.bf16.mxu1 %v1469_v27 }
  0xf1   : > { %1472 = vmatpush3.bf16.msra.mxu0 %v1469_v27 }
  0xf2   : > { %1558 = vmatpush3.bf16.msra.mxu1 %v1469_v27  ;;  %1474 = vmatprep.subr.bf16.mxu0 %v1473_v30 }
  0xf3   : > { %1551 = vmatprep.subr.bf16.mxu1 %v1473_v30 }
  0xf5   : > { %1476 = vmatpush3.bf16.msra.mxu0 %v1473_v30 }
  0xf6   : > { %1559 = vmatpush3.bf16.msra.mxu1 %v1473_v30  ;;  %1478 = vmatprep.subr.bf16.mxu0 %v1477_v35 }
  0xf7   : > { %1552 = vmatprep.subr.bf16.mxu1 %v1477_v35 }
  0xf9   : > { %1480 = vmatpush3.bf16.msra.mxu0 %v1477_v35 }
  0xfa   : > { %1560 = vmatpush3.bf16.msra.mxu1 %v1477_v35 }
  0xfc   : > { %1350 = vmatmul.mubr.f32.vlgmr.msra.gmra.mrb[0].mxu0 %v487_v48 }
  0xfd   : > { %1356 = vmatmul.mubr.f32.vlgmr.msra.gmra.mrb[0].mxu1 %v491_v49  ;;  %1352 = vmatprep.mubr.f32.mxu0 %v488_v52 }
  0xfe   : > { %1358 = vmatprep.mubr.f32.mxu1 %v492_v53 }
 0x100   : > { %1353 = vmatmul.mubr.f32.gmra.mrb[2].mxu0 %v489_v56 }
 0x101   : > { %1359 = vmatmul.mubr.f32.gmra.mrb[2].mxu1 %v493_v57 }
 0x1cf   : > { %v1351_v58 = vpop.f32.mrb[0].mxu0 }
 0x1d0   : > { %v1357_v59 = vpop.f32.mrb[0].mxu1  ;;  %v1227_v60 = vmul.f32 -1.442695, %v1351_v58  ;;  %v576_v62 = vpop.f32.mrb[1].mxu0 }
 0x1d1   : > { %v1231_v61 = vmul.f32 -1.442695, %v1357_v59  ;;  %v596_v63 = vpop.f32.mrb[1].mxu1  ;;  %v1226_v0 = vmul.f32 -1.442695, %v576_v62 }
 0x1d2   : > { %v1230_v1 = vmul.f32 -1.442695, %v596_v63  ;;  %1695 = vpow2.f32 %v1227_v60 }
 0x1d3   : > { %1697 = vpow2.f32 %v1231_v61  ;;  %v1354_v2 = vpop.f32.mrb[2].mxu0 }
 0x1d4   : > { %v1360_v3 = vpop.f32.mrb[2].mxu1  ;;  %1699 = vpow2.f32 %v1226_v0  ;;  %v1229_v4 = vmul.f32 -1.442695, %v1354_v2  ;;  %v586_v6 = vpop.f32.mrb[3].mxu0 }
 0x1d5   : > { %v1233_v5 = vmul.f32 -1.442695, %v1360_v3  ;;  %v606_v7 = vpop.f32.mrb[3].mxu1  ;;  %1701 = vpow2.f32 %v1230_v1  ;;  %v1228_v8 = vmul.f32 -1.442695, %v586_v6 }
 0x1d6   : > { %v1232_v9 = vmul.f32 -1.442695, %v606_v7  ;;  %1703 = vpow2.f32 %v1229_v4 }
 0x1d7   : > { %1705 = vpow2.f32 %v1233_v5 }
 0x1d8   : > { %1707 = vpow2.f32 %v1228_v8 }
 0x1d9   : > { %1709 = vpow2.f32 %v1232_v9 }
 0x1dc   : > { %v1696_v10 = vpop.eup %1695 }
 0x1dd   : > { %v1698_v11 = vpop.eup %1697  ;;  %v640_v12 = vadd.f32 1.0, %v1696_v10 }
 0x1de   : > { %v1700_v13 = vpop.eup %1699  ;;  %v644_v14 = vadd.f32 1.0, %v1698_v11 }
 0x1df   : > { %v1702_v15 = vpop.eup %1701  ;;  %1711 = vrcp.f32 %v640_v12  ;;  %v639_v16 = vadd.f32 1.0, %v1700_v13 }
 0x1e0   : > { %v1704_v17 = vpop.eup %1703  ;;  %1713 = vrcp.f32 %v644_v14  ;;  %v643_v18 = vadd.f32 1.0, %v1702_v15 }
 0x1e1   : > { %v1706_v19 = vpop.eup %1705  ;;  %1715 = vrcp.f32 %v639_v16  ;;  %v642_v20 = vadd.f32 1.0, %v1704_v17 }
 0x1e2   : > { %v1708_v21 = vpop.eup %1707  ;;  %1717 = vrcp.f32 %v643_v18  ;;  %v646_v22 = vadd.f32 1.0, %v1706_v19 }
 0x1e3   : > { %v1710_v23 = vpop.eup %1709  ;;  %1719 = vrcp.f32 %v642_v20  ;;  %v641_v24 = vadd.f32 1.0, %v1708_v21 }
 0x1e4   : > { %1721 = vrcp.f32 %v646_v22  ;;  %v645_v25 = vadd.f32 1.0, %v1710_v23 }
 0x1e5   : > { %1723 = vrcp.f32 %v641_v24 }
 0x1e6   : > { %1725 = vrcp.f32 %v645_v25 }
 0x1e9   : > { %v1712_v26 = vpop.eup %1711 }
 0x1ea   : > { %v1714_v27 = vpop.eup %1713  ;;  %664 = vst [vmem:[#allocation3 + $0x8] sm:$0xff] %v1712_v26 }
 0x1eb   : > { %v1716_v28 = vpop.eup %1715  ;;  %668 = vst [vmem:[#allocation3 + $0x28] sm:$0xff] %v1714_v27 }
 0x1ec   : > { %v1718_v29 = vpop.eup %1717  ;;  %663 = vst [vmem:[#allocation3] sm:$0xff] %v1716_v28 }
 0x1ed   : > { %v1720_v30 = vpop.eup %1719  ;;  %667 = vst [vmem:[#allocation3 + $0x20] sm:$0xff] %v1718_v29 }
 0x1ee   : > { %v1722_v31 = vpop.eup %1721  ;;  %666 = vst [vmem:[#allocation3 + $0x18] sm:$0xff] %v1720_v30 }
 0x1ef   : > { %v1724_v32 = vpop.eup %1723  ;;  %670 = vst [vmem:[#allocation3 + $0x38] sm:$0xff] %v1722_v31 }
 0x1f0   : > { %v1726_v33 = vpop.eup %1725  ;;  %665 = vst [vmem:[#allocation3 + $0x10] sm:$0xff] %v1724_v32 }
 0x1f1   : > { %669 = vst [vmem:[#allocation3 + $0x30] sm:$0xff] %v1726_v33 }
 0x1f2 PF: > { %v710_v34 = vld [vmem:[%s2422_s22] sm:$0xff]  ;;  %v711_v35 = vld [vmem:[%s2422_s22 + $0x8] sm:$0xff]  ;;  %v712_v36 = vld [vmem:[%s2422_s22 + $0x10] sm:$0xff]  ;;  %s2681_s30 = sld [smem:[#allocation31_spill]]  ;;  %s2682_s21 = sld [smem:[#allocation21_spill]] }
 0x1f3   : > { %v1481_v37 = vpack.c.bf16 %v711_v35, %v710_v34  ;;  %v713_v38 = vld [vmem:[%s2422_s22 + $0x18] sm:$0xff]  ;;  %v714_v40 = vld [vmem:[%s2422_s22 + $0x20] sm:$0xff]  ;;  %v715_v41 = vld [vmem:[%s2422_s22 + $0x28] sm:$0xff] }
 0x1f4   : > { %v1485_v39 = vpack.c.bf16 %v713_v38, %v712_v36  ;;  %v1489_v42 = vpack.c.bf16 %v715_v41, %v714_v40  ;;  %v716_v43 = vld [vmem:[%s2422_s22 + $0x30] sm:$0xff]  ;;  %v679_v44 = vld [vmem:[%s2415_s8] sm:$0xff]  ;;  %v717_v45 = vld [vmem:[%s2422_s22 + $0x38] sm:$0xff] }
 0x1f5   : > { %1482 = vmatprep.subr.bf16.mxu0 %v1481_v37  ;;  %v671_v46 = vld [vmem:[%s2408_s14] sm:$0xff]  ;;  %v1493_v49 = vpack.c.bf16 %v717_v45, %v716_v43  ;;  %v719_v52 = vld [vmem:[%s2422_s22 + $0x48] sm:$0xff]  ;;  %v857_v55 = vld [vmem:[%s2428_s19 + $0x10] sm:$0xff] }
 0x1f6   : > { %1484 = vmatpush3.bf16.msra.mxu0 %v1481_v37  ;;  %v718_v51 = vld [vmem:[%s2422_s22 + $0x40] sm:$0xff]  ;;  %v856_v54 = vld [vmem:[%s2428_s19 + $0x8] sm:$0xff]  ;;  %v858_v57 = vld [vmem:[%s2428_s19 + $0x18] sm:$0xff] }
 0x1f7   : > { %1486 = vmatprep.subr.bf16.mxu0 %v1485_v39  ;;  %v855_v53 = vld [vmem:[%s2428_s19] sm:$0xff]  ;;  %v1497_v58 = vpack.c.bf16 %v719_v52, %v718_v51  ;;  %v1517_v59 = vpack.c.bf16 %v858_v57, %v857_v55  ;;  %v860_v61 = vld [vmem:[%s2428_s19 + $0x28] sm:$0xff]  ;;  %v720_v62 = vld [vmem:[%s2422_s22 + $0x50] sm:$0xff] }
 0x1f8   : > { %v2483_v47 = vld [vmem:[%s2681_s30] ss:$0 sm:$0xff]  ;;  %v1513_v56 = vpack.c.bf16 %v856_v54, %v855_v53  ;;  %v721_v63 = vld [vmem:[%s2422_s22 + $0x58] sm:$0xff]  ;;  %v861_v2 = vld [vmem:[%s2428_s19 + $0x30] sm:$0xff]  ;;  %p1235_p10 = scmp.ne.s32.totalorder %s2682_s21, 1 }
 0x1f9   : > { %v694_v48 = vmul.f32 %v2483_v47, %v679_v44  ;;  %v859_v60 = vld [vmem:[%s2428_s19 + $0x20] sm:$0xff]  ;;  %v1501_v1 = vpack.c.bf16 %v721_v63, %v720_v62  ;;  %v862_v3 = vld [vmem:[%s2428_s19 + $0x38] sm:$0xff]  ;;  %v723_v5 = vld [vmem:[%s2422_s22 + $0x68] sm:$0xff] }
 0x1fa   : > { %1488 = vmatpush3.bf16.msra.mxu0 %v1485_v39  ;;  %1514 = vmatprep.subr.bf16.mxu1 %v1513_v56  ;;  %v1521_v0 = vpack.c.bf16 %v860_v61, %v859_v60  ;;  %v722_v4 = vld [vmem:[%s2422_s22 + $0x60] sm:$0xff]  ;;  %v1525_v6 = vpack.c.bf16 %v862_v3, %v861_v2  ;;  %v864_v9 = vld [vmem:[%s2428_s19 + $0x48] sm:$0xff]  ;;  %v724_v10 = vld [vmem:[%s2422_s22 + $0x70] sm:$0xff] }
 0x1fb   : > { %1490 = vmatprep.subr.bf16.mxu0 %v1489_v42  ;;  %v702_v50 = vadd.f32 %v694_v48, %v671_v46  ;;  %1516 = vmatpush3.bf16.msra.mxu1 %v1513_v56  ;;  %v1505_v7 = vpack.c.bf16 %v723_v5, %v722_v4  ;;  %v863_v8 = vld [vmem:[%s2428_s19 + $0x40] sm:$0xff]  ;;  %v725_v11 = vld [vmem:[%s2422_s22 + $0x78] sm:$0xff]  ;;  %v680_v12 = vld [vmem:[%s2415_s8 + $0x8] sm:$0xff] }
 0x1fc   : > { %1518 = vmatprep.subr.bf16.mxu1 %v1517_v59  ;;  %v1529_v13 = vpack.c.bf16 %v864_v9, %v863_v8  ;;  %v1509_v14 = vpack.c.bf16 %v725_v11, %v724_v10  ;;  %v681_v15 = vld [vmem:[%s2415_s8 + $0x10] sm:$0xff]  ;;  %v866_v17 = vld [vmem:[%s2428_s19 + $0x58] sm:$0xff]  ;;  %v695_v18 = vmul.f32 %v2483_v47, %v680_v12  ;;  %v672_v19 = vld [vmem:[%s2408_s14 + $0x8] sm:$0xff] }
 0x1fd   : > { %1393 = vmatprep.mubr.f32.mxu0 %v702_v50  ;;  %v865_v16 = vld [vmem:[%s2428_s19 + $0x50] sm:$0xff]  ;;  %v696_v21 = vmul.f32 %v2483_v47, %v681_v15  ;;  %v682_v22 = vld [vmem:[%s2415_s8 + $0x18] sm:$0xff]  ;;  %v683_v24 = vld [vmem:[%s2415_s8 + $0x20] sm:$0xff] }
 0x1fe   : > { %1492 = vmatpush3.bf16.msra.mxu0 %v1489_v42  ;;  %v673_v20 = vld [vmem:[%s2408_s14 + $0x10] sm:$0xff]  ;;  %v1533_v23 = vpack.c.bf16 %v866_v17, %v865_v16  ;;  %v867_v25 = vld [vmem:[%s2428_s19 + $0x60] sm:$0xff]  ;;  %v868_v26 = vld [vmem:[%s2428_s19 + $0x68] sm:$0xff]  ;;  %v703_v27 = vadd.f32 %v695_v18, %v672_v19  ;;  %v697_v28 = vmul.f32 %v2483_v47, %v682_v22  ;;  %v698_v31 = vmul.f32 %v2483_v47, %v683_v24 }
 0x1ff   : > { %1494 = vmatprep.subr.bf16.mxu0 %v1493_v49  ;;  %1520 = vmatpush3.bf16.msra.mxu1 %v1517_v59  ;;  %v704_v29 = vadd.f32 %v696_v21, %v673_v20  ;;  %v674_v30 = vld [vmem:[%s2408_s14 + $0x18] sm:$0xff]  ;;  %v684_v32 = vld [vmem:[%s2415_s8 + $0x28] sm:$0xff]  ;;  %v1537_v33 = vpack.c.bf16 %v868_v26, %v867_v25  ;;  %v675_v34 = vld [vmem:[%s2408_s14 + $0x20] sm:$0xff] }
 0x200   : > { %1522 = vmatprep.subr.bf16.mxu1 %v1521_v0  ;;  %v685_v35 = vld [vmem:[%s2415_s8 + $0x30] sm:$0xff]  ;;  %v705_v36 = vadd.f32 %v697_v28, %v674_v30  ;;  %v699_v37 = vmul.f32 %v2483_v47, %v684_v32  ;;  %v706_v38 = vadd.f32 %v698_v31, %v675_v34  ;;  %v676_v39 = vld [vmem:[%s2408_s14 + $0x28] sm:$0xff]  ;;  %v686_v41 = vld [vmem:[%s2415_s8 + $0x38] sm:$0xff] }
 0x201   : > { %v700_v40 = vmul.f32 %v2483_v47, %v685_v35  ;;  %v677_v42 = vld [vmem:[%s2408_s14 + $0x30] sm:$0xff]  ;;  %v701_v44 = vmul.f32 %v2483_v47, %v686_v41  ;;  %v678_v46 = vld [vmem:[%s2408_s14 + $0x38] sm:$0xff]  ;;  %v848_v11 = vld [vmem:[#allocation2 + $0x8] sm:$0xff] }
 0x202   : > { %1496 = vmatpush3.bf16.msra.mxu0 %v1493_v49  ;;  %v707_v43 = vadd.f32 %v699_v37, %v676_v39  ;;  %v869_v49 = vld [vmem:[%s2428_s19 + $0x70] sm:$0xff]  ;;  %v870_v50 = vld [vmem:[%s2428_s19 + $0x78] sm:$0xff]  ;;  %v847_v12 = vld [vmem:[#allocation2] sm:$0xff] }
 0x203   : > { %1498 = vmatprep.subr.bf16.mxu0 %v1497_v58  ;;  %1524 = vmatpush3.bf16.msra.mxu1 %v1521_v0  ;;  %v708_v45 = vadd.f32 %v700_v40, %v677_v42  ;;  %v709_v48 = vadd.f32 %v701_v44, %v678_v46  ;;  %v1541_v51 = vpack.c.bf16 %v870_v50, %v869_v49  ;;  %v850_v17 = vld [vmem:[#allocation2 + $0x18] sm:$0xff]  ;;  %v849_v18 = vld [vmem:[#allocation2 + $0x10] sm:$0xff]  ;;  %v851_v24 = vld [vmem:[#allocation2 + $0x20] sm:$0xff] }
 0x204   : > { %1526 = vmatprep.subr.bf16.mxu1 %v1525_v6  ;;  %v853_v30 = vld [vmem:[#allocation2 + $0x30] sm:$0xff]  ;;  %v996_v35 = vld [vmem:[#allocation3] sm:$0xff] (!%p1235_p10)  ;;  %v997_v37 = vld [vmem:[#allocation3 + $0x8] sm:$0xff] (!%p1235_p10) }
 0x205   : > { %v998_v40 = vld [vmem:[#allocation3 + $0x10] sm:$0xff] (!%p1235_p10)  ;;  %v999_v44 = vld [vmem:[#allocation3 + $0x18] sm:$0xff] (!%p1235_p10)  ;;  %v1000_v46 = vld [vmem:[#allocation3 + $0x20] sm:$0xff] (!%p1235_p10) }
 0x206   : > { %1500 = vmatpush3.bf16.msra.mxu0 %v1497_v58  ;;  %v1001_v50 = vld [vmem:[#allocation3 + $0x28] sm:$0xff] (!%p1235_p10) }
 0x207   : > { %1502 = vmatprep.subr.bf16.mxu0 %v1501_v1  ;;  %1528 = vmatpush3.bf16.msra.mxu1 %v1525_v6 }
 0x208   : > { %1530 = vmatprep.subr.bf16.mxu1 %v1529_v13 }
 0x20a   : > { %1504 = vmatpush3.bf16.msra.mxu0 %v1501_v1 }
 0x20b   : > { %1506 = vmatprep.subr.bf16.mxu0 %v1505_v7  ;;  %1532 = vmatpush3.bf16.msra.mxu1 %v1529_v13 }
 0x20c   : > { %1534 = vmatprep.subr.bf16.mxu1 %v1533_v23 }
 0x20e   : > { %1508 = vmatpush3.bf16.msra.mxu0 %v1505_v7 }
 0x20f   : > { %1510 = vmatprep.subr.bf16.mxu0 %v1509_v14  ;;  %1536 = vmatpush3.bf16.msra.mxu1 %v1533_v23  ;;  %v852_v23 = vld [vmem:[#allocation2 + $0x28] sm:$0xff] }
 0x210   : > { %1538 = vmatprep.subr.bf16.mxu1 %v1537_v33 }
 0x212   : > { %1512 = vmatpush3.bf16.msra.mxu0 %v1509_v14 }
 0x213   : > { %1540 = vmatpush3.bf16.msra.mxu1 %v1537_v33 }
 0x214   : > { %1542 = vmatprep.subr.bf16.mxu1 %v1541_v51 }
 0x215   : > { %1394 = vmatmul.mubr.f32.vlgmr.msra.gmra.mrb[0].mxu0 %v703_v27 }
 0x216   : > { %1396 = vmatprep.mubr.f32.mxu0 %v704_v29  ;;  %v854_v29 = vld [vmem:[#allocation2 + $0x38] sm:$0xff] }
 0x217   : > { %1544 = vmatpush3.bf16.msra.mxu1 %v1541_v51 }
 0x219   : > { %1397 = vmatmul.mubr.f32.gmra.mrb[2].mxu0 %v705_v36 }
 0x21a   : > { %1399 = vmatprep.mubr.f32.mxu0 %v706_v38 }
 0x21d   : > { %1400 = vmatmul.mubr.f32.gmra.mrb[4].mxu0 %v707_v43 }
 0x21e   : > { %1402 = vmatprep.mubr.f32.mxu0 %v708_v45 }
 0x221   : > { %1403 = vmatmul.mubr.f32.gmra.mrb[6].mxu0 %v709_v48 }
 0x2e8   : > { %v1395_v52 = vpop.f32.mrb[0].mxu0 }
 0x2e9   : > { %v832_v53 = vmax.f32 %v1395_v52, 0.0  ;;  %v792_v54 = vpop.f32.mrb[1].mxu0 }
 0x2ea   : > { %v831_v55 = vmax.f32 %v792_v54, 0.0  ;;  %v1002_v54 = vld [vmem:[#allocation3 + $0x30] sm:$0xff] (!%p1235_p10) }
 0x2eb   : > { %v840_v47 = vmul.f32 %v832_v53, %v832_v53 }
 0x2ec   : > { %v1398_v56 = vpop.f32.mrb[2].mxu0  ;;  %v839_v57 = vmul.f32 %v831_v55, %v831_v55 }
 0x2ed   : > { %v834_v58 = vmax.f32 %v1398_v56, 0.0  ;;  %v802_v59 = vpop.f32.mrb[3].mxu0  ;;  %v1003_v56 = vld [vmem:[#allocation3 + $0x38] sm:$0xff] (!%p1235_p10) }
 0x2ee   : > { %v833_v60 = vmax.f32 %v802_v59, 0.0  ;;  %1437 = vmatprep.mubr.f32.mxu1 %v839_v57 }
 0x2ef   : > { %1438 = vmatmul.mubr.f32.vlgmr.msra.gmra.mrb[0].mxu1 %v840_v47  ;;  %v842_v63 = vmul.f32 %v834_v58, %v834_v58 }
 0x2f0   : > { %v841_v61 = vmul.f32 %v833_v60, %v833_v60  ;;  %v1401_v62 = vpop.f32.mrb[4].mxu0 }
 0x2f1   : > { %v836_v0 = vmax.f32 %v1401_v62, 0.0  ;;  %v812_v1 = vpop.f32.mrb[5].mxu0 }
 0x2f2   : > { %v835_v2 = vmax.f32 %v812_v1, 0.0  ;;  %1440 = vmatprep.mubr.f32.mxu1 %v841_v61 }
 0x2f3   : > { %1441 = vmatmul.mubr.f32.gmra.mrb[2].mxu1 %v842_v63  ;;  %v844_v5 = vmul.f32 %v836_v0, %v836_v0 }
 0x2f4   : > { %v843_v3 = vmul.f32 %v835_v2, %v835_v2  ;;  %v1404_v4 = vpop.f32.mrb[6].mxu0 }
 0x2f5   : > { %v838_v6 = vmax.f32 %v1404_v4, 0.0  ;;  %v822_v7 = vpop.f32.mrb[7].mxu0 }
 0x2f6   : > { %v837_v8 = vmax.f32 %v822_v7, 0.0  ;;  %1443 = vmatprep.mubr.f32.mxu1 %v843_v3 }
 0x2f7   : > { %1444 = vmatmul.mubr.f32.gmra.mrb[4].mxu1 %v844_v5  ;;  %v846_v10 = vmul.f32 %v838_v6, %v838_v6 }
 0x2f8   : > { %v845_v9 = vmul.f32 %v837_v8, %v837_v8 }
 0x2fa   : > { %1446 = vmatprep.mubr.f32.mxu1 %v845_v9 }
 0x2fb   : > { %1447 = vmatmul.mubr.f32.gmra.mrb[6].mxu1 %v846_v10 }
 0x3c2   : > { %v1439_v13 = vpop.f32.mrb[0].mxu1 }
 0x3c3   : > { %v977_v14 = vadd.f32 %v1439_v13, %v848_v11  ;;  %v937_v15 = vpop.f32.mrb[1].mxu1 }
 0x3c4   : > { %v976_v16 = vadd.f32 %v937_v15, %v847_v12 }
 0x3c5   : > { %985 = vst [vmem:[#allocation2 + $0x8] sm:$0xff] %v977_v14 }
 0x3c6   : > { %984 = vst [vmem:[#allocation2] sm:$0xff] %v976_v16  ;;  %v1442_v19 = vpop.f32.mrb[2].mxu1 }
 0x3c7   : > { %v979_v20 = vadd.f32 %v1442_v19, %v850_v17  ;;  %v947_v21 = vpop.f32.mrb[3].mxu1 }
 0x3c8   : > { %v978_v22 = vadd.f32 %v947_v21, %v849_v18 }
 0x3c9   : > { %987 = vst [vmem:[#allocation2 + $0x18] sm:$0xff] %v979_v20 }
 0x3ca   : > { %986 = vst [vmem:[#allocation2 + $0x10] sm:$0xff] %v978_v22  ;;  %v1445_v25 = vpop.f32.mrb[4].mxu1 }
 0x3cb   : > { %v981_v26 = vadd.f32 %v1445_v25, %v852_v23  ;;  %v957_v27 = vpop.f32.mrb[5].mxu1 }
 0x3cc   : > { %v980_v28 = vadd.f32 %v957_v27, %v851_v24  ;;  %995 = sbr.rel (%p1235_p10) target bundleno = 989 (0x3dd), region = 76  ;;  %v1005_v39 = vld [vmem:[#allocation2 + $0x8] sm:$0xff] (!%p1235_p10) }
 0x3cd   : > { %989 = vst [vmem:[#allocation2 + $0x28] sm:$0xff] %v981_v26  ;;  %v1004_v36 = vld [vmem:[#allocation2] sm:$0xff] (!%p1235_p10)  ;;  %v1013_v42 = vmul.f32 (!%p1235_p10), %v1005_v39, %v997_v37 }
 0x3ce   : > { %988 = vst [vmem:[#allocation2 + $0x20] sm:$0xff] %v980_v28  ;;  %v1448_v31 = vpop.f32.mrb[6].mxu1  ;;  %v1012_v38 = vmul.f32 (!%p1235_p10), %v1004_v36, %v996_v35 }
 0x3cf   : > { %v983_v32 = vadd.f32 %v1448_v31, %v854_v29  ;;  %v967_v33 = vpop.f32.mrb[7].mxu1  ;;  %1021 = vst [vmem:[%s2438_s15 + $0x8] sm:$0xff] (!%p1235_p10), %v1013_v42 }
 0x3d0   : > { %v982_v34 = vadd.f32 %v967_v33, %v853_v30  ;;  %v1007_v45 = vld [vmem:[#allocation2 + $0x18] sm:$0xff] (!%p1235_p10)  ;;  %1020 = vst [vmem:[%s2438_s15] sm:$0xff] (!%p1235_p10), %v1012_v38 }
 0x3d1   : > { %991 = vst [vmem:[#allocation2 + $0x38] sm:$0xff] %v983_v32  ;;  %v1006_v41 = vld [vmem:[#allocation2 + $0x10] sm:$0xff] (!%p1235_p10)  ;;  %v1015_v48 = vmul.f32 (!%p1235_p10), %v1007_v45, %v999_v44 }
 0x3d2   : > { %990 = vst [vmem:[#allocation2 + $0x30] sm:$0xff] %v982_v34  ;;  %v1014_v43 = vmul.f32 (!%p1235_p10), %v1006_v41, %v998_v40 }
 0x3d3   : > { %1023 = vst [vmem:[%s2438_s15 + $0x18] sm:$0xff] %v1015_v48 }
 0x3d4   : > { %v1009_v51 = vld [vmem:[#allocation2 + $0x28] sm:$0xff]  ;;  %1022 = vst [vmem:[%s2438_s15 + $0x10] sm:$0xff] %v1014_v43 }
 0x3d5   : > { %v1008_v49 = vld [vmem:[#allocation2 + $0x20] sm:$0xff]  ;;  %v1017_v53 = vmul.f32 %v1009_v51, %v1001_v50 }
 0x3d6   : > { %v1016_v52 = vmul.f32 %v1008_v49, %v1000_v46 }
 0x3d7   : > { %1025 = vst [vmem:[%s2438_s15 + $0x28] sm:$0xff] %v1017_v53 }
 0x3d8   : > { %v1011_v47 = vld [vmem:[#allocation2 + $0x38] sm:$0xff]  ;;  %1024 = vst [vmem:[%s2438_s15 + $0x20] sm:$0xff] %v1016_v52 }
 0x3d9   : > { %v1010_v55 = vld [vmem:[#allocation2 + $0x30] sm:$0xff]  ;;  %v1019_v58 = vmul.f32 %v1011_v47, %v1003_v56 }
 0x3da   : > { %v1018_v57 = vmul.f32 %v1010_v55, %v1002_v54 }
 0x3db   : > { %1027 = vst [vmem:[%s2438_s15 + $0x38] sm:$0xff] %v1019_v58 }
 0x3dc   : > { %1026 = vst [vmem:[%s2438_s15 + $0x30] sm:$0xff] %v1018_v57 }
 0x3dd PF: > { %s2683_s20 = sld [smem:[#allocation22_spill]]  ;;  %s2684_s14 = sld [smem:[#allocation28_spill]] }
 0x3de   : > { %s2685_s13 = sld [smem:[#allocation34_spill]]  ;;  %s1042_s17 = sshll.u32 %s2438_s15, 4  ;;  %s2547_s17 = int_to_ptr.vmem [resolvable:$true] %s1042_s17 }
 0x3df   : > { %s1029_s22 = scalar_lea.sflag [#allocation6], %s2404_s27  ;;  %s1875_s16 = scalar_lea.vmem %s2547_s17, 1024 }
 0x3e0   : > { %p1876_p13 = scmp.ne.s32.totalorder %s2547_s17, %s1875_s16  ;;  %s2024_s19 = smov [#allocation13]  }
 0x3e1   : > { %s1879_s3 = sshll.u32 %s2024_s19, 4  ;;  %s1880_s3 = int_to_ptr.vmem [resolvable:$false] %s1879_s3 }
 0x3e2   : > { %s1881_s12 = scalar_lea.vmem %s1880_s3, 2048  ;;  %p1882_p9 = scmp.lt.s32.totalorder %s2547_s17, %s1880_s3 }
 0x3e3   : > { %s1244_s6 = sshll.u32 %s2683_s20, 10  ;;  %p2686_p3 = scmp.ne.s32.totalorder %s2684_s14, 0 }
 0x3e4   : > { %s2544_s2 = scalar_lea.hbm %s2685_s13, %s1244_s6  ;;  %p1883_p4 = scmp.lt.s32.totalorder %s1881_s12, %s1875_s16 }
 0x3e5   : > { %p1877_p7 = pnand %p1876_p13, %p2686_p3 }
 0x3e6   : > { %p1884_p5 = por %p1883_p4, %p1882_p9 }
 0x3e7   : > { %p1878_p1 = pneg %p1877_p7 }
 0x3e9   : > { %p1885_p2 = pnand %p1884_p5, %p1878_p1 }
 0x3eb   : > { %1888 = shalt.err (!%p1885_p2)
}
 0x3ec   : > { %s1889_s15 = scalar_lea.hbm %s2544_s2, 1024  ;;  %s1893_s23 = scalar_lea.hbm %s2685_s13, 2048 }
 0x3ed   : > { %p1890_p11 = scmp.ne.s32.totalorder %s2544_s2, %s1889_s15  ;;  %p1894_p6 = scmp.lt.u32.totalorder %s2544_s2, %s2685_s13 }
 0x3ee   : > { %p1895_p8 = scmp.lt.u32.totalorder %s1893_s23, %s1889_s15  ;;  %p1897_p13 = scmp.lt.u32.totalorder %s1889_s15, %s2544_s2 }
 0x3ef   : > { %p1891_p12 = pnand %p1890_p11, %p2686_p3 }
 0x3f0   : > { %p1896_p10 = por %p1895_p8, %p1894_p6 }
 0x3f1   : > { %p1892_p0 = pneg %p1891_p12 }
 0x3f2   : > { %p1898_p7 = por %p1897_p13, %p1896_p10 }
 0x3f4   : > { %p1899_p1 = pnand %p1898_p7, %p1892_p0 }
 0x3f6   : > { %1902 = shalt.err (!%p1899_p1)
}
 0x3f7   : > { %s2025_s21 = smov 128   ;;  %s2026_s20 = smov 8  }
 0x3f8   : > { %1573 = dma.vmem_to_hbm [thread:$0]  (%p2686_p3), %s2547_s17, 1024, %s2544_s2, %s1029_s22, %s2025_s21, %s2025_s21, %s2026_s20  }
 0x3f9 PF: > { %s2687_s6 = sld [smem:[#allocation20_spill]]  ;;  %s2688_s18 = sld [smem:[#allocation24_spill]] }
 0x3fa   : > { %p1599_p9 = scmp.ge.s32.totalorder %s2013_s11, 2 }
 0x3ff   : > { %s1057_s8 = sand.u32 1, %s2687_s6   ;;  %p2689_p4 = scmp.ne.s32.totalorder %s2688_s18, 0 }
 0x400   : > { %s1058_s16 = scalar_lea.sflag [#allocation6], %s1057_s8 }
 0x401   : > { %p1593_p5 = pnand %p1599_p9, %p2689_p4 }
 0x403   : > { %1968 = dma.done.wait (!%p1593_p5), %s1058_s16, 1024  }
 0x404   : > { %1970 = vsyncadd (!%p1593_p5), %s1058_s16, 4294966272  ;;  %s29_s11 = sadd.s32 1, %s2013_s11   ;;  %s2690_s19 = sld [smem:[#allocation27_spill]] }
 0x405   : > { %p26_p2 = scmp.ge.s32.totalorder %s29_s11, 6   ;;  %s2691_s14 = sld [smem:[#allocation29_spill]] }
 0x406   : > { %s2692_s2 = sld [smem:[#allocation25_spill]]  ;;  %s2693_s17 = sld [smem:[#allocation26_spill]] }
 0x407   : > { %s2694_s24 = smov %s1977_s25  ;;  %s2695_s25 = smov %s1981_s26 }
 0x408   : > { %s2697_s27 = smov %s1989_s28  ;;  %s2698_s28 = smov %s1993_s29 }
 0x409   : > { %s2700_s30 = smov %s2005_s9  ;;  %s2701_s8 = smov %s2009_s10 }
 0x40a   : > { %s2696_s26 = smov %s2690_s19  ;;  %28 = sbr.rel (!%p26_p2) target bundleno = 19 (0x13), region = 142 }
 0x40b   : > { %s2699_s29 = smov %s2691_s14 }
 0x40c   : > { %s2702_s9 = smov %s2692_s2  ;;  %s2703_s10 = smov %s2693_s17 }
 0x411   :  { %1063 = vsyncpa [#allocation5], 1 }
 0x412   :  { %1065 = vsyncpa [#allocation5 + $0x1], 1 }
 0x413   :  { %1066 = vsyncpa [#allocation8], 1 }
 0x414   :  { %1068 = vsyncpa [#allocation8 + $0x1], 1 }
 0x415   :  { %1069 = vsyncpa [#allocation11], 1 }
 0x416   :  { %1071 = vsyncpa [#allocation11 + $0x1], 1 }
 0x417   :  { %1072 = vsyncpa [#allocation6], 1 }
 0x418   :  { %1074 = vsyncpa [#allocation6 + $0x1], 1 }

</bundles_post_ra>
